<compile_context>
chip_gen: v5e
topology: v5e:2x2
jax: 0.10.0
libtpu: 0.0.40
codegen_flags: <defaults>
</compile_context>

<pallas_src>
import jax
import jax.numpy as jnp
from jax.experimental import pallas as pl
from jax.experimental.pallas import tpu as pltpu

HIDDEN_SIZE = 32


def _actor_kernel(scale_ref, s_ref, w1_ref, b1_ref, w2_ref, b2_ref,
                  w3_ref, b3_ref, mu_ref):
    """One batch tile. Activations are [features, batch_tile] (batch on lanes)."""
    scale = scale_ref[0]                                                # SMEM f32
    x = s_ref[...]                                                      # [S, TB]

    # fc1 + ReLU  (MXU matmul, f32 accumulation)
    h1 = jnp.dot(w1_ref[...], x, preferred_element_type=jnp.float32)   # [H, TB]
    h1 = jnp.maximum(h1 + b1_ref[...], 0.0)

    # fc2 + ReLU
    h2 = jnp.dot(w2_ref[...], h1, preferred_element_type=jnp.float32)  # [H, TB]
    h2 = jnp.maximum(h2 + b2_ref[...], 0.0)

    # fc_mu + tanh, scaled  (tanh goes to the EUP slot)
    mu = jnp.dot(w3_ref[...], h2, preferred_element_type=jnp.float32)  # [A, TB]
    mu = scale * jnp.tanh(mu + b3_ref[...])
    mu_ref[...] = mu.astype(mu_ref.dtype)


def actor_continuous_forward(s, params, action_scale=1.0, block_b=256):
    """Pallas forward pass for ActorContinuous.

    s:      [B, state_dim] float32
    params: PyTorch-layout dict:
              w1 [H, S], b1 [H], w2 [H, H], b2 [H], w3 [A, H], b3 [A]
    Returns mu: [B, action_dim]
    """
    B, S = s.shape
    H = params["w1"].shape[0]
    A = params["w3"].shape[0]

    # Batch-on-lanes layout: transpose to [S, B] and pad the batch (lane axis)
    # up to a multiple of the tile so every store is lane-dense.
    TB = int(block_b)
    n_tiles = pl.cdiv(B, TB)
    B_pad = n_tiles * TB
    x = s.T                                   # [S, B]  (layout plumbing only)
    if B_pad != B:
        x = jnp.pad(x, ((0, 0), (0, B_pad - B)))

    # Biases as column vectors so they broadcast over the lane (batch) axis.
    b1 = params["b1"].reshape(H, 1)
    b2 = params["b2"].reshape(H, 1)
    b3 = params["b3"].reshape(A, 1)
    scale = jnp.asarray([action_scale], dtype=jnp.float32)

    resident = lambda shape: pl.BlockSpec(shape, lambda i: (0, 0))

    mu_t = pl.pallas_call(
        _actor_kernel,
        out_shape=jax.ShapeDtypeStruct((A, B_pad), s.dtype),
        grid=(n_tiles,),
        in_specs=[
            pl.BlockSpec(memory_space=pltpu.MemorySpace.SMEM),   # action_scale
            pl.BlockSpec((S, TB), lambda i: (0, i)),             # s (transposed)
            resident((H, S)),                                    # w1
            resident((H, 1)),                                    # b1
            resident((H, H)),                                    # w2
            resident((H, 1)),                                    # b2
            resident((A, H)),                                    # w3
            resident((A, 1)),                                    # b3
        ],
        out_specs=pl.BlockSpec((A, TB), lambda i: (0, i)),
        compiler_params=pltpu.CompilerParams(
            dimension_semantics=("parallel",),
        ),
    )(scale, x, params["w1"], b1, params["w2"], b2, params["w3"], b3)

    # Drop batch padding and return to the [B, A] convention.
    return mu_t[:, :B].T


def init_params(key, state_dim, action_dim, hidden=HIDDEN_SIZE):
    """Deterministic synthetic parameter init in PyTorch Linear layout
    (weight [out, in], bias [out])."""
    ks = jax.random.split(key, 6)
    scale = 0.1
    return {
        "w1": scale * jax.random.normal(ks[0], (hidden, state_dim), jnp.float32),
        "b1": scale * jax.random.normal(ks[1], (hidden,), jnp.float32),
        "w2": scale * jax.random.normal(ks[2], (hidden, hidden), jnp.float32),
        "b2": scale * jax.random.normal(ks[3], (hidden,), jnp.float32),
        "w3": scale * jax.random.normal(ks[4], (action_dim, hidden), jnp.float32),
        "b3": scale * jax.random.normal(ks[5], (action_dim,), jnp.float32),
    }


def reference_forward(s, params, action_scale=1.0):
    x = jnp.maximum(s @ params["w1"].T + params["b1"], 0.0)
    x = jnp.maximum(x @ params["w2"].T + params["b2"], 0.0)
    return action_scale * jnp.tanh(x @ params["w3"].T + params["b3"])


if __name__ == "__main__":
    key = jax.random.PRNGKey(0)
    k_s, k_p, k_big = jax.random.split(key, 3)

    state_dim = 8
    action_dim = 4
    action_scale = 2.0
    params = init_params(k_p, state_dim, action_dim)

    # Small-shape check (matches the module spec): batch=2.
    s_small = jax.random.normal(k_s, (2, state_dim), jnp.float32)
    mu_small = jax.block_until_ready(
        actor_continuous_forward(s_small, params, action_scale=action_scale))
    ref_small = reference_forward(s_small, params, action_scale=action_scale)
    assert mu_small.shape == (2, action_dim)
    assert jnp.allclose(mu_small, ref_small, atol=1e-5, rtol=1e-5), (mu_small, ref_small)

    # Multi-tile check: exercises batch tiling (grid > 1) and batch padding.
    s_big = jax.random.normal(k_big, (600, state_dim), jnp.float32)
    mu_big = jax.block_until_ready(
        actor_continuous_forward(s_big, params, action_scale=action_scale))
    ref_big = reference_forward(s_big, params, action_scale=action_scale)
    assert mu_big.shape == (600, action_dim)
    assert jnp.allclose(mu_big, ref_big, atol=1e-5, rtol=1e-5)

    print("KERNEL_OK")
</pallas_src>

<mosaic_0001>
module attributes {stable_mosaic.version = 11 : i64} {
  func.func @_actor_kernel(%arg0: i32, %arg1: memref<1xf32, #tpu.memory_space<smem>>, %arg2: memref<8x256xf32, #tpu.memory_space<vmem>>, %arg3: memref<32x8xf32, #tpu.memory_space<vmem>>, %arg4: memref<32x1xf32, #tpu.memory_space<vmem>>, %arg5: memref<32x32xf32, #tpu.memory_space<vmem>>, %arg6: memref<32x1xf32, #tpu.memory_space<vmem>>, %arg7: memref<4x32xf32, #tpu.memory_space<vmem>>, %arg8: memref<4x1xf32, #tpu.memory_space<vmem>>, %arg9: memref<4x256xf32, #tpu.memory_space<vmem>>) attributes {dimension_semantics = [#tpu.dimension_semantics<parallel>], iteration_bounds = array<i64: 1>, scalar_prefetch = 0 : i64, scratch_operands = 0 : i64, tpu.core_type = #tpu.core_type<tc>, window_params = [{transform_indices = @transform_0, window_bounds = array<i64: 1>}, {transform_indices = @transform_1, window_bounds = array<i64: 8, 256>}, {pipeline_mode = #tpu.pipeline_mode<synchronous>, transform_indices = @transform_2, window_bounds = array<i64: 32, 8>}, {pipeline_mode = #tpu.pipeline_mode<synchronous>, transform_indices = @transform_3, window_bounds = array<i64: 32, 1>}, {pipeline_mode = #tpu.pipeline_mode<synchronous>, transform_indices = @transform_4, window_bounds = array<i64: 32, 32>}, {pipeline_mode = #tpu.pipeline_mode<synchronous>, transform_indices = @transform_5, window_bounds = array<i64: 32, 1>}, {pipeline_mode = #tpu.pipeline_mode<synchronous>, transform_indices = @transform_6, window_bounds = array<i64: 4, 32>}, {pipeline_mode = #tpu.pipeline_mode<synchronous>, transform_indices = @transform_7, window_bounds = array<i64: 4, 1>}, {transform_indices = @transform_8, window_bounds = array<i64: 4, 256>}]} {
    %c0 = arith.constant 0 : index
    %0 = memref.load %arg1[%c0] : memref<1xf32, #tpu.memory_space<smem>>
    %c0_0 = arith.constant 0 : index
    %c0_1 = arith.constant 0 : index
    %1 = vector.load %arg2[%c0_0, %c0_1] : memref<8x256xf32, #tpu.memory_space<vmem>>, vector<8x256xf32>
    %c0_2 = arith.constant 0 : index
    %c0_3 = arith.constant 0 : index
    %2 = vector.load %arg3[%c0_2, %c0_3] : memref<32x8xf32, #tpu.memory_space<vmem>>, vector<32x8xf32>
    %cst = arith.constant dense<0.000000e+00> : vector<32x256xf32>
    %3 = tpu.matmul %2, %1, %cst {dimension_numbers = #tpu.dot_dimension_numbers<[1], [0], [0], [1], [0, 0, 1, 1], [], []>} : vector<32x8xf32>, vector<8x256xf32>, vector<32x256xf32> -> vector<32x256xf32>
    %c0_4 = arith.constant 0 : index
    %c0_5 = arith.constant 0 : index
    %4 = vector.load %arg4[%c0_4, %c0_5] : memref<32x1xf32, #tpu.memory_space<vmem>>, vector<32x1xf32>
    %5 = vector.broadcast %4 : vector<32x1xf32> to vector<32x256xf32>
    %6 = arith.addf %3, %5 : vector<32x256xf32>
    %cst_6 = arith.constant 0.000000e+00 : f32
    %7 = vector.broadcast %cst_6 : f32 to vector<32x256xf32>
    %8 = arith.maximumf %6, %7 : vector<32x256xf32>
    %c0_7 = arith.constant 0 : index
    %c0_8 = arith.constant 0 : index
    %9 = vector.load %arg5[%c0_7, %c0_8] : memref<32x32xf32, #tpu.memory_space<vmem>>, vector<32x32xf32>
    %cst_9 = arith.constant dense<0.000000e+00> : vector<32x256xf32>
    %10 = tpu.matmul %9, %8, %cst_9 {dimension_numbers = #tpu.dot_dimension_numbers<[1], [0], [0], [1], [0, 0, 1, 1], [], []>} : vector<32x32xf32>, vector<32x256xf32>, vector<32x256xf32> -> vector<32x256xf32>
    %c0_10 = arith.constant 0 : index
    %c0_11 = arith.constant 0 : index
    %11 = vector.load %arg6[%c0_10, %c0_11] : memref<32x1xf32, #tpu.memory_space<vmem>>, vector<32x1xf32>
    %12 = vector.broadcast %11 : vector<32x1xf32> to vector<32x256xf32>
    %13 = arith.addf %10, %12 : vector<32x256xf32>
    %cst_12 = arith.constant 0.000000e+00 : f32
    %14 = vector.broadcast %cst_12 : f32 to vector<32x256xf32>
    %15 = arith.maximumf %13, %14 : vector<32x256xf32>
    %c0_13 = arith.constant 0 : index
    %c0_14 = arith.constant 0 : index
    %16 = vector.load %arg7[%c0_13, %c0_14] : memref<4x32xf32, #tpu.memory_space<vmem>>, vector<4x32xf32>
    %cst_15 = arith.constant dense<0.000000e+00> : vector<4x256xf32>
    %17 = tpu.matmul %16, %15, %cst_15 {dimension_numbers = #tpu.dot_dimension_numbers<[1], [0], [0], [1], [0, 0, 1, 1], [], []>} : vector<4x32xf32>, vector<32x256xf32>, vector<4x256xf32> -> vector<4x256xf32>
    %c0_16 = arith.constant 0 : index
    %c0_17 = arith.constant 0 : index
    %18 = vector.load %arg8[%c0_16, %c0_17] : memref<4x1xf32, #tpu.memory_space<vmem>>, vector<4x1xf32>
    %19 = vector.broadcast %18 : vector<4x1xf32> to vector<4x256xf32>
    %20 = arith.addf %17, %19 : vector<4x256xf32>
    %21 = math.tanh %20 : vector<4x256xf32>
    %22 = vector.broadcast %0 : f32 to vector<4x256xf32>
    %23 = arith.mulf %22, %21 : vector<4x256xf32>
    %c0_18 = arith.constant 0 : index
    %c0_19 = arith.constant 0 : index
    %24 = vector.load %arg9[%c0_18, %c0_19] : memref<4x256xf32, #tpu.memory_space<vmem>>, vector<4x256xf32>
    tpu.vector_store %arg9[%c0_18, %c0_19], %23 {strides = array<i32>} : memref<4x256xf32, #tpu.memory_space<vmem>>, vector<4x256xf32>,
    return
  }
  func.func @transform_0(%arg0: i32) -> i32 {
    %c0_i32 = arith.constant 0 : i32
    %c0_i32_0 = arith.constant 0 : i32
    return %c0_i32 : i32
  }
  func.func @transform_1(%arg0: i32) -> (i32, i32) {
    %c0_i32 = arith.constant 0 : i32
    %c0_i32_0 = arith.constant 0 : i32
    return %c0_i32, %arg0 : i32, i32
  }
  func.func @transform_2(%arg0: i32) -> (i32, i32) {
    %c0_i32 = arith.constant 0 : i32
    %c0_i32_0 = arith.constant 0 : i32
    %c0_i32_1 = arith.constant 0 : i32
    return %c0_i32, %c0_i32_0 : i32, i32
  }
  func.func @transform_3(%arg0: i32) -> (i32, i32) {
    %c0_i32 = arith.constant 0 : i32
    %c0_i32_0 = arith.constant 0 : i32
    %c0_i32_1 = arith.constant 0 : i32
    return %c0_i32, %c0_i32_0 : i32, i32
  }
  func.func @transform_4(%arg0: i32) -> (i32, i32) {
    %c0_i32 = arith.constant 0 : i32
    %c0_i32_0 = arith.constant 0 : i32
    %c0_i32_1 = arith.constant 0 : i32
    return %c0_i32, %c0_i32_0 : i32, i32
  }
  func.func @transform_5(%arg0: i32) -> (i32, i32) {
    %c0_i32 = arith.constant 0 : i32
    %c0_i32_0 = arith.constant 0 : i32
    %c0_i32_1 = arith.constant 0 : i32
    return %c0_i32, %c0_i32_0 : i32, i32
  }
  func.func @transform_6(%arg0: i32) -> (i32, i32) {
    %c0_i32 = arith.constant 0 : i32
    %c0_i32_0 = arith.constant 0 : i32
    %c0_i32_1 = arith.constant 0 : i32
    return %c0_i32, %c0_i32_0 : i32, i32
  }
  func.func @transform_7(%arg0: i32) -> (i32, i32) {
    %c0_i32 = arith.constant 0 : i32
    %c0_i32_0 = arith.constant 0 : i32
    %c0_i32_1 = arith.constant 0 : i32
    return %c0_i32, %c0_i32_0 : i32, i32
  }
  func.func @transform_8(%arg0: i32) -> (i32, i32) {
    %c0_i32 = arith.constant 0 : i32
    %c0_i32_0 = arith.constant 0 : i32
    return %c0_i32, %arg0 : i32, i32
  }
}

</mosaic_0001>

<bundles_post_ra>
// kernel: tpu_custom_call.1
= control target key start
LH: loop header
LB: loop body
LE: loop exit
PB: predicated region body
PF: predicated region fallthrough
CT: control target
= control target key end

     0   :  { %vm62_vm0 = vcmask 64512   ;;  %v379_v5 = vmov 0   ;;  %s510_s0 = inlined_call_operand.<no memory space> [shape: f32[1], index: 0, kind: input, shape index: {}]   ;;  %s511_s1 = inlined_call_operand.vmem [shape: f32[8,256], index: 1, kind: input, shape index: {}]   ;;  %s512_s2 = inlined_call_operand.vmem [shape: f32[32,8], index: 2, kind: input, shape index: {}]   ;;  %s513_s3 = inlined_call_operand.vmem [shape: f32[32,1], index: 3, kind: input, shape index: {}]   ;;  %s514_s4 = inlined_call_operand.vmem [shape: f32[32,32], index: 4, kind: input, shape index: {}]   ;;  %s515_s5 = inlined_call_operand.vmem [shape: f32[32,1], index: 5, kind: input, shape index: {}]   ;;  %s516_s6 = inlined_call_operand.vmem [shape: f32[4,32], index: 6, kind: input, shape index: {}]   ;;  %s517_s7 = inlined_call_operand.vmem [shape: f32[4,1], index: 7, kind: input, shape index: {}]   ;;  %s518_s8 = inlined_call_operand.hbm [shape: f32[4,256], index: 8, kind: output, shape index: {}]  }
   0x1   :  { %v32_v0 = vld [vmem:[%s511_s1] sm:$0xff]  ;;  %v33_v1 = vld [vmem:[%s511_s1 + $0x8] sm:$0xff]  ;;  %v41_v4 = vld [vmem:[%s513_s3 + $0x18] sm:$0xff]  ;;  %347 = vset.pattern.permute.xlu1 %v379_v5  ;;  %346 = vset.pattern.permute.xlu0 %v379_v5 }
   0x2   :  { %v34_v2 = vld [vmem:[%s512_s2] sm:$0xff]  ;;  %90 = vmatpush.msra.mxu0 %v32_v0  ;;  %119 = vmatpush.msra.mxu1 %v33_v1  ;;  %v39_v3 = vld [vmem:[%s513_s3 + $0x8] sm:$0xff] }
   0x3   :  { %326 = vmatmul.msk.f32.vlgmr.msra.gmra.mxu0 %vm62_vm0, %v34_v2  ;;  %330 = vmatmul.msk.f32.vlgmr.msra.gmra.mxu1 %vm62_vm0, %v34_v2 }
   0x4   :  { %49 = vperm.xlu1 %347, %v39_v3   ;;  %59 = vperm.xlu0 %346, %v41_v4  }
   0x5   :  { %14 = vsyncpa [#allocation4], 0  ;;  %348 = vset.pattern.permute.xlu2 %v379_v5  ;;  %v35_v6 = vld [vmem:[%s512_s2 + $0x8] sm:$0xff]  ;;  %v38_v7 = vld [vmem:[%s513_s3] sm:$0xff]  ;;  %vm169_vm1 = vcmask 261120   ;;  %s317_s21 = sshll.u32 %s518_s8, 4  ;;  %s318_s21 = int_to_ptr.hbm [resolvable:$true] %s317_s21 }
   0x6   :  { %v40_v8 = vld [vmem:[%s513_s3 + $0x10] sm:$0xff]  ;;  %v146_v10 = vld [vmem:[%s515_s5 + $0x8] sm:$0xff]  ;;  %v145_v11 = vld [vmem:[%s515_s5] sm:$0xff]  ;;  %vm306_vm2 = vcmask 1043456  }
   0x7   :  { %v36_v9 = vld [vmem:[%s512_s2 + $0x10] sm:$0xff]  ;;  %v37_v12 = vld [vmem:[%s512_s2 + $0x18] sm:$0xff]  ;;  %v141_v42 = vld [vmem:[%s514_s4] sm:$0xff] }
   0x8   :  { %v148_v33 = vld [vmem:[%s515_s5 + $0x18] sm:$0xff]  ;;  %v147_v43 = vld [vmem:[%s515_s5 + $0x10] sm:$0xff]  ;;  %v142_v44 = vld [vmem:[%s514_s4 + $0x8] sm:$0xff] }
   0x9   :  { %166 = vperm.xlu2 %348, %v148_v33   ;;  %v249_v45 = vld [vmem:[%s517_s7] sm:$0xf]  ;;  %v143_v46 = vld [vmem:[%s514_s4 + $0x10] sm:$0xff]  ;;  %v144_v47 = vld [vmem:[%s514_s4 + $0x18] sm:$0xff] }
   0xb   :  { %327 = vmatmul.msk.f32.gmra.mxu0 %vm62_vm0, %v35_v6  ;;  %331 = vmatmul.msk.f32.gmra.mxu1 %vm62_vm0, %v35_v6 }
   0xc   :  { %44 = vperm.xlu1 %347, %v38_v7   ;;  %54 = vperm.xlu0 %346, %v40_v8  }
  0x11   :  { %161 = vperm.xlu2 %348, %v147_v43  }
  0x13   :  { %328 = vmatmul.msk.f32.gmra.mxu0 %vm62_vm0, %v36_v9  ;;  %332 = vmatmul.msk.f32.gmra.mxu1 %vm62_vm0, %v36_v9 }
  0x14   :  { %156 = vperm.xlu0 %346, %v146_v10   ;;  %151 = vperm.xlu1 %347, %v145_v11  }
  0x19   :  { %252 = vperm.xlu2 %348, %v249_v45  }
  0x1b   :  { %329 = vmatmul.msk.f32.gmra.mxu0 %vm62_vm0, %v37_v12  ;;  %333 = vmatmul.msk.f32.gmra.mxu1 %vm62_vm0, %v37_v12  ;;  %v248_v12 = vld [vmem:[%s516_s6] sm:$0xf]  ;;  %s380_s6 = smov [#allocation3]  }
  0x1c   :  { %s315_s18 = sshll.u32 %s380_s6, 4  ;;  %s316_s18 = int_to_ptr.vmem [resolvable:$true] %s315_s18 }
  0x63   :  { %v167_v52 = vpop.permute.xlu2 %166 }
  0x6b   :  { %v162_v55 = vpop.permute.xlu2 %161 }
  0x76   :  { %v60_v17 = vpop.permute.xlu0 %59  ;;  %v50_v18 = vpop.permute.xlu1 %49 }
  0x7e   :  { %v55_v21 = vpop.permute.xlu0 %54  ;;  %v45_v28 = vpop.permute.xlu1 %44 }
  0x80   :  { %v92_v13 = vpop.f32.mrf.mxu0  ;;  %v121_v14 = vpop.f32.mrf.mxu1 }
  0x81   :  { %v93_v34 = vadd.f32 %v92_v13, %v45_v28  ;;  %v122_v35 = vadd.f32 %v121_v14, %v45_v28  ;;  %v253_v13 = vpop.permute.xlu2 %252 }
  0x83   :  { %v133_v40 = vmax.f32 %v93_v34, 0.0  ;;  %v134_v41 = vmax.f32 %v122_v35, 0.0 }
  0x86   :  { %v157_v62 = vpop.permute.xlu0 %156  ;;  %v152_v3 = vpop.permute.xlu1 %151 }
  0x88   :  { %v95_v15 = vpop.f32.mrf.mxu0  ;;  %v124_v16 = vpop.f32.mrf.mxu1 }
  0x89   :  { %v96_v29 = vadd.f32 %v95_v15, %v50_v18  ;;  %v125_v30 = vadd.f32 %v124_v16, %v50_v18  ;;  %v300_v18 = vstv %s510_s0 }
  0x8b   :  { %v135_v38 = vmax.f32 %v96_v29, 0.0  ;;  %v136_v39 = vmax.f32 %v125_v30, 0.0 }
  0x90   :  { %v98_v19 = vpop.f32.mrf.mxu0  ;;  %v127_v20 = vpop.f32.mrf.mxu1 }
  0x91   :  { %v99_v24 = vadd.f32 %v98_v19, %v55_v21  ;;  %v128_v25 = vadd.f32 %v127_v20, %v55_v21 }
  0x93   :  { %v137_v36 = vmax.f32 %v99_v24, 0.0  ;;  %v138_v37 = vmax.f32 %v128_v25, 0.0 }
  0x98   :  { %v101_v22 = vpop.f32.mrf.mxu0  ;;  %v130_v23 = vpop.f32.mrf.mxu1 }
  0x99   :  { %v102_v26 = vadd.f32 %v101_v22, %v60_v17  ;;  %v131_v27 = vadd.f32 %v130_v23, %v60_v17 }
  0x9b   :  { %v139_v31 = vmax.f32 %v102_v26, 0.0  ;;  %v140_v32 = vmax.f32 %v131_v27, 0.0 }
  0x9d   :  { %194 = vmatpush.msra.mxu2 %v139_v31  ;;  %223 = vmatpush.msra.mxu3 %v140_v32 }
  0x9f   :  { %195 = vmatpush.msra.mxu2 %v137_v36  ;;  %224 = vmatpush.msra.mxu3 %v138_v37 }
  0xa1   :  { %196 = vmatpush.msra.mxu2 %v135_v38  ;;  %225 = vmatpush.msra.mxu3 %v136_v39 }
  0xa3   :  { %197 = vmatpush.msra.mxu2 %v133_v40  ;;  %226 = vmatpush.msra.mxu3 %v134_v41 }
  0xa4   :  { %334 = vmatmul.msk.f32.vlgmr.msra.gmra.mxu2 %vm169_vm1, %v141_v42  ;;  %338 = vmatmul.msk.f32.vlgmr.msra.gmra.mxu3 %vm169_vm1, %v141_v42 }
  0xac   :  { %335 = vmatmul.msk.f32.gmra.mxu2 %vm169_vm1, %v142_v44  ;;  %339 = vmatmul.msk.f32.gmra.mxu3 %vm169_vm1, %v142_v44 }
  0xb4   :  { %336 = vmatmul.msk.f32.gmra.mxu2 %vm169_vm1, %v143_v46  ;;  %340 = vmatmul.msk.f32.gmra.mxu3 %vm169_vm1, %v143_v46 }
  0xbc   :  { %337 = vmatmul.msk.f32.gmra.mxu2 %vm169_vm1, %v144_v47  ;;  %341 = vmatmul.msk.f32.gmra.mxu3 %vm169_vm1, %v144_v47 }
 0x127   :  { %v199_v48 = vpop.f32.mrf.mxu2  ;;  %v228_v49 = vpop.f32.mrf.mxu3 }
 0x128   :  { %v200_v4 = vadd.f32 %v199_v48, %v152_v3  ;;  %v229_v5 = vadd.f32 %v228_v49, %v152_v3 }
 0x12a   :  { %v240_v10 = vmax.f32 %v200_v4, 0.0  ;;  %v241_v11 = vmax.f32 %v229_v5, 0.0 }
 0x12f   :  { %v202_v50 = vpop.f32.mrf.mxu2  ;;  %v231_v51 = vpop.f32.mrf.mxu3 }
 0x130   :  { %v203_v63 = vadd.f32 %v202_v50, %v157_v62  ;;  %v232_v0 = vadd.f32 %v231_v51, %v157_v62 }
 0x132   :  { %v242_v8 = vmax.f32 %v203_v63, 0.0  ;;  %v243_v9 = vmax.f32 %v232_v0, 0.0 }
 0x137   :  { %v205_v53 = vpop.f32.mrf.mxu2  ;;  %v234_v54 = vpop.f32.mrf.mxu3 }
 0x138   :  { %v206_v58 = vadd.f32 %v205_v53, %v162_v55  ;;  %v235_v59 = vadd.f32 %v234_v54, %v162_v55 }
 0x13a   :  { %v244_v6 = vmax.f32 %v206_v58, 0.0  ;;  %v245_v7 = vmax.f32 %v235_v59, 0.0 }
 0x13f   :  { %v208_v56 = vpop.f32.mrf.mxu2  ;;  %v237_v57 = vpop.f32.mrf.mxu3 }
 0x140   :  { %v209_v60 = vadd.f32 %v208_v56, %v167_v52  ;;  %v238_v61 = vadd.f32 %v237_v57, %v167_v52 }
 0x142   :  { %v246_v1 = vmax.f32 %v209_v60, 0.0  ;;  %v247_v2 = vmax.f32 %v238_v61, 0.0 }
 0x144   :  { %270 = vmatpush.msrb.mxu0 %v246_v1  ;;  %290 = vmatpush.msrb.mxu1 %v247_v2 }
 0x146   :  { %271 = vmatpush.msrb.mxu0 %v244_v6  ;;  %291 = vmatpush.msrb.mxu1 %v245_v7 }
 0x148   :  { %272 = vmatpush.msrb.mxu0 %v242_v8  ;;  %292 = vmatpush.msrb.mxu1 %v243_v9 }
 0x14a   :  { %273 = vmatpush.msrb.mxu0 %v240_v10  ;;  %293 = vmatpush.msrb.mxu1 %v241_v11 }
 0x14b   :  { %342 = vmatmul.msk.f32.vlgmr.msrb.gmra.mxu0 %vm169_vm1, %v248_v12  ;;  %343 = vmatmul.msk.f32.vlgmr.msrb.gmra.mxu1 %vm169_vm1, %v248_v12 }
 0x1c8   :  { %v275_v14 = vpop.f32.mrf.mxu0  ;;  %v295_v15 = vpop.f32.mrf.mxu1 }
 0x1c9   :  { %v276_v16 = vadd.f32 %v275_v14, %v253_v13  ;;  %v296_v17 = vadd.f32 %v295_v15, %v253_v13 }
 0x1cb   :  { %349 = vtanh.f32 %v276_v16 }
 0x1cc   :  { %351 = vtanh.f32 %v296_v17 }
 0x1d1   :  { %v350_v19 = vpop.eup %349 }
 0x1d2   :  { %v352_v20 = vpop.eup %351  ;;  %v301_v22 = vmul.f32 %v350_v19, %v300_v18 }
 0x1d3   :  { %v302_v21 = vmul.f32 %v352_v20, %v300_v18 }
 0x1d5   :  { %v305_v23 = vrot.slane %v302_v21, 4 }
 0x1d7   :  { %v307_v24 = vsel %vm306_vm2, %v301_v22, %v305_v23 }
 0x1d8   :  { %309 = vst [vmem:[#allocation3] sm:$0xff] %v307_v24 }
 0x1d9   :  { %320 = dma.vmem_to_hbm [thread:$0]  %s316_s18, 128, %s318_s21, [#allocation4]  }
 0x1da   :  { %377 = dma.done.wait [#allocation4], 128  }
 0x1db   :  { %378 = vsyncadd [#allocation4], 4294967168 }
 0x1dc   :  { %325 = vsyncpa [#allocation4], 1 }

</bundles_post_ra>
